<compile_context>
chip_gen: v5e
topology: v5e:2x2
jax: 0.10.0
libtpu: 0.0.40
codegen_flags: <defaults>
</compile_context>

<pallas_src>
import jax
import jax.numpy as jnp
from jax.experimental import pallas as pl
from jax.experimental.pallas import tpu as pltpu

# Split the HBM->HBM copy into multiple DMAs only when it is big enough for
# engine overlap to matter; tiny copies use a single DMA.
_CHUNK_THRESHOLD_BYTES = 256 * 1024
_MAX_DMA_CHUNKS = 4


def _make_hbm_copy_kernel(n_chunks: int, chunk_rows: int):
    """Kernel: direct HBM->HBM DMA copy, split into `n_chunks` row chunks."""

    def kernel(x_hbm, o_hbm, sem):
        copies = []
        for c in range(n_chunks):           # static Python loop, small trip count
            lo = c * chunk_rows
            hi = lo + chunk_rows
            cp = pltpu.make_async_copy(x_hbm.at[lo:hi], o_hbm.at[lo:hi], sem.at[c])
            cp.start()
            copies.append(cp)
        for cp in copies:                   # all DMAs in flight, then drain
            cp.wait()

    return kernel


def _pick_chunks(shape, nbytes: int) -> int:
    """Number of DMA chunks along axis 0 (must divide dim0)."""
    if not shape or nbytes < _CHUNK_THRESHOLD_BYTES:
        return 1
    dim0 = shape[0]
    for n in (_MAX_DMA_CHUNKS, 2, 1):
        if dim0 >= n and dim0 % n == 0:
            return n
    return 1


def _materialized_copy(x: jnp.ndarray) -> jnp.ndarray:
    """Fresh copy of x via a direct HBM->HBM DMA (no VMEM staging, no grid)."""
    # 0-d arrays: DMA of a scalar ref is pointless; promote to shape (1,).
    squeeze_back = False
    if x.ndim == 0:
        x = x.reshape(1)
        squeeze_back = True

    nbytes = x.size * jnp.dtype(x.dtype).itemsize
    n_chunks = _pick_chunks(x.shape, nbytes)
    chunk_rows = x.shape[0] // n_chunks

    y = pl.pallas_call(
        _make_hbm_copy_kernel(n_chunks, chunk_rows),
        out_shape=jax.ShapeDtypeStruct(x.shape, x.dtype),
        in_specs=[pl.BlockSpec(memory_space=pl.ANY)],
        out_specs=pl.BlockSpec(memory_space=pl.ANY),
        scratch_shapes=[pltpu.SemaphoreType.DMA((n_chunks,))],
        cost_estimate=pl.CostEstimate(
            flops=0,
            transcendentals=0,
            bytes_accessed=2 * nbytes,
        ),
    )(x)

    if squeeze_back:
        y = y.reshape(())
    return y


def agent_core_forward(x: jnp.ndarray, *, materialize: bool = False,
                       alias_in_out: bool = False) -> jnp.ndarray:
    """Pallas implementation of AgentCore.forward (identity).

    Default: return x (true identity, zero HBM traffic — the optimal path).
    materialize=True: produce a fresh copy via a direct HBM->HBM DMA kernel.
    alias_in_out=True: semantically identical to the identity, so it is a
      no-op (an aliased self-copy would only burn HBM bandwidth).
    """
    if not materialize or alias_in_out:
        return x
    return _materialized_copy(x)


if __name__ == "__main__":
    # Small, deterministic example consistent with the module:
    # batch=8 "token" rows, model_dim=768 (the module default).
    key = jax.random.PRNGKey(0)
    batch, model_dim = 8, 768
    x = jax.random.normal(key, (batch, model_dim), dtype=jnp.float32)

    # Deterministic params for the unused dummy nn.Linear(model_dim, model_dim)
    # (constructed only to mirror __init__; forward never applies it).
    kw, _ = jax.random.split(jax.random.PRNGKey(1))
    _dummy_w = jax.random.normal(kw, (model_dim, model_dim), jnp.float32) * 0.02
    _dummy_b = jnp.zeros((model_dim,), jnp.float32)
    # TODO(synk): planner/executor/memory/tool-registry/Agent are host-side
    # async control logic (no tensor compute); no Pallas equivalent.

    # 1) Default identity path: no kernel, no HBM traffic.
    y_fast = jax.block_until_ready(agent_core_forward(x))

    # 2) Materialized-copy path: exercises the single-DMA HBM->HBM kernel.
    y_copy = jax.block_until_ready(agent_core_forward(x, materialize=True))

    # 3) Aliased path: semantically identity -> no kernel launched.
    y_alias = jax.block_until_ready(
        agent_core_forward(x, materialize=True, alias_in_out=True))

    # 4) A 3-D input (sequence of activations) through the same DMA copy path.
    x3d = jax.random.normal(jax.random.PRNGKey(2), (2, batch, model_dim),
                            dtype=jnp.float32)
    y3d = jax.block_until_ready(agent_core_forward(x3d, materialize=True))

    # 5) A larger input that exercises the multi-chunk DMA path (4 chunks).
    xbig = jax.random.normal(jax.random.PRNGKey(3), (128, model_dim),
                             dtype=jnp.float32)
    ybig = jax.block_until_ready(agent_core_forward(xbig, materialize=True))

    assert y_fast.shape == x.shape and y_fast.dtype == x.dtype
    assert bool(jnp.array_equal(y_fast, x))
    assert y_copy.shape == x.shape and y_copy.dtype == x.dtype
    assert bool(jnp.array_equal(y_copy, x))
    assert y_alias.shape == x.shape and y_alias.dtype == x.dtype
    assert bool(jnp.array_equal(y_alias, x))
    assert y3d.shape == x3d.shape and bool(jnp.array_equal(y3d, x3d))
    assert ybig.shape == xbig.shape and bool(jnp.array_equal(ybig, xbig))
    print("KERNEL_OK")
</pallas_src>

<mosaic_0001>
module attributes {stable_mosaic.version = 11 : i64} {
  func.func @kernel(%arg0: memref<8x768xf32, #tpu.memory_space<any>>, %arg1: memref<8x768xf32, #tpu.memory_space<any>>, %arg2: memref<1x!tpu.dma_semaphore, #tpu.memory_space<semaphore_mem>>) attributes {dimension_semantics = [], scalar_prefetch = 0 : i64, scratch_operands = 1 : i64, tpu.core_type = #tpu.core_type<tc>} {
    %c0_i32 = arith.constant 0 : i32
    %c0_i32_0 = arith.constant 0 : i32
    %c0_i32_1 = arith.constant 0 : i32
    %0 = tpu.memref_slice %arg0[%c0_i32_0, %c0_i32_1] : memref<8x768xf32, #tpu.memory_space<any>> -> memref<8x768xf32, #tpu.memory_space<any>>
    %c0_i32_2 = arith.constant 0 : i32
    %c0_i32_3 = arith.constant 0 : i32
    %1 = tpu.memref_slice %arg1[%c0_i32_2, %c0_i32_3] : memref<8x768xf32, #tpu.memory_space<any>> -> memref<8x768xf32, #tpu.memory_space<any>>
    %2 = tpu.memref_slice %arg2[%c0_i32] : memref<1x!tpu.dma_semaphore, #tpu.memory_space<semaphore_mem>> -> memref<1x!tpu.dma_semaphore, #tpu.memory_space<semaphore_mem>>
    %3 = tpu.memref_squeeze %2 : memref<1x!tpu.dma_semaphore, #tpu.memory_space<semaphore_mem>> -> memref<!tpu.dma_semaphore, #tpu.memory_space<semaphore_mem>>
    tpu.enqueue_dma source(%0 : memref<8x768xf32, #tpu.memory_space<any>>) target(%1 : memref<8x768xf32, #tpu.memory_space<any>>) target_semaphore(%3 : memref<!tpu.dma_semaphore, #tpu.memory_space<semaphore_mem>>)
    %c0_i32_4 = arith.constant 0 : i32
    %c0_i32_5 = arith.constant 0 : i32
    %c0_i32_6 = arith.constant 0 : i32
    %4 = tpu.memref_slice %arg0[%c0_i32_5, %c0_i32_6] : memref<8x768xf32, #tpu.memory_space<any>> -> memref<8x768xf32, #tpu.memory_space<any>>
    %c0_i32_7 = arith.constant 0 : i32
    %c0_i32_8 = arith.constant 0 : i32
    %5 = tpu.memref_slice %arg1[%c0_i32_7, %c0_i32_8] : memref<8x768xf32, #tpu.memory_space<any>> -> memref<8x768xf32, #tpu.memory_space<any>>
    %6 = tpu.memref_slice %arg2[%c0_i32_4] : memref<1x!tpu.dma_semaphore, #tpu.memory_space<semaphore_mem>> -> memref<1x!tpu.dma_semaphore, #tpu.memory_space<semaphore_mem>>
    %7 = tpu.memref_squeeze %6 : memref<1x!tpu.dma_semaphore, #tpu.memory_space<semaphore_mem>> -> memref<!tpu.dma_semaphore, #tpu.memory_space<semaphore_mem>>
    tpu.wait_dma2 semaphore(%7 : memref<!tpu.dma_semaphore, #tpu.memory_space<semaphore_mem>>) src(%4 : memref<8x768xf32, #tpu.memory_space<any>>) dst(%5 : memref<8x768xf32, #tpu.memory_space<any>>)
    return
  }
}

</mosaic_0001>

<bundles_post_ra>
// kernel: tpu_custom_call.1
= control target key start
LH: loop header
LB: loop body
LE: loop exit
PB: predicated region body
PF: predicated region fallthrough
CT: control target
= control target key end

     0   :  { %s33_s12 = smov [#allocation2]   ;;  %s34_s13 = smov [#allocation3]   ;;  %s52_s0 = inlined_call_operand.hbm [shape: f32[8,768], index: 0, kind: input, shape index: {}]   ;;  %s53_s1 = inlined_call_operand.hbm [shape: f32[8,768], index: 1, kind: output, shape index: {}]  }
   0x1   :  { %s10_s8 = sshll.u32 %s52_s0, 4  ;;  %s12_s11 = sshll.u32 %s53_s1, 4  ;;  %s11_s8 = int_to_ptr.hbm [resolvable:$true] %s10_s8  ;;  %s13_s11 = int_to_ptr.hbm [resolvable:$true] %s12_s11 }
   0x2   :  { %s35_s14 = smov 0  }
   0x3   :  { %16 = dma.general %s11_s8, 768, %s13_s11, %s33_s12, %s34_s13, [#allocation4], %s35_s14, 0  }
   0x4   :  { %31 = dma.done.wait [#allocation2], 768 }
   0x5   :  { %32 = vsyncadd [#allocation2], 4294966528 }
   0x6   :  { %21 = vsyncmov [#allocation2] }
   0x9   :  { %s22_s15 = vpop.sfrf %21 }
   0xa   :  { %p27_p0 = scmp.ne.s32.totalorder %s22_s15, 0 }
   0xc   :  { %26 = shalt.err (%p27_p0)  }

</bundles_post_ra>
